<compile_context>
chip_gen: v7x
topology: tpu7x:2x2x1
jax: 0.10.0
libtpu: 0.0.40
codegen_flags: <defaults>
</compile_context>

<pallas_src>
import functools
import math

import jax
import jax.numpy as jnp
from jax import lax
from jax.experimental import pallas as pl
from jax.experimental.pallas import tpu as pltpu


def _mha_kernel(x_ref, wqkv_ref, wh_ref, bh_ref,
                h_ref, a_ref, hcat_scratch,
                *, num_heads: int, d_k: int, seq_len: int, block_b: int,
                d_model: int):
    # Packed QKV projection: one MXU matmul over all rows.
    #   x_ref:    (Bb*S, 3D) bf16   [X_q | X_k | X_v]
    #   wqkv_ref: (3D, 3D)   bf16   block-diag(W_q^T * scale, W_k^T, W_v^T)
    qkv = jnp.dot(x_ref[...], wqkv_ref[...],
                  preferred_element_type=jnp.float32)   # (Bb*S, 3D) f32
    qkv16 = qkv.astype(jnp.bfloat16)                    # MXU operands in bf16

    # Per (batch, head) attention.  block_b * num_heads is small and static,
    # so this unrolls; softmax math stays in f32 (v5e has no bf16 VPU/EUP).
    for b in range(block_b):
        rows = slice(b * seq_len, (b + 1) * seq_len)
        for h in range(num_heads):
            q_cols = slice(h * d_k, (h + 1) * d_k)
            k_cols = slice(d_model + h * d_k, d_model + (h + 1) * d_k)
            v_cols = slice(2 * d_model + h * d_k, 2 * d_model + (h + 1) * d_k)

            qh = qkv16[rows, q_cols]                    # (S, d_k) bf16
            kh = qkv16[rows, k_cols]
            vh = qkv16[rows, v_cols]

            # Q @ K^T without an explicit transpose: contract last dims.
            scores = lax.dot_general(
                qh, kh,
                dimension_numbers=(((1,), (1,)), ((), ())),
                preferred_element_type=jnp.float32)     # (S, S) f32

            m = jnp.max(scores, axis=-1, keepdims=True)
            e = jnp.exp(scores - m)
            denom = jnp.sum(e, axis=-1, keepdims=True)
            a = e * pl.reciprocal(denom, approx=True)   # EUP, not VPU divide

            # Store this head's attention tile immediately (overlaps the
            # output writeback DMA with the next head's compute).
            a_ref[b, h] = a.astype(a_ref.dtype)

            ctx = jnp.dot(a.astype(jnp.bfloat16), vh,
                          preferred_element_type=jnp.float32)   # (S, d_k)
            hcat_scratch[rows, q_cols] = ctx            # slab write, no concat

    # Output projection over the whole block at once, plus bias.
    out = jnp.dot(hcat_scratch[...].astype(jnp.bfloat16), wh_ref[...],
                  preferred_element_type=jnp.float32) + bh_ref[...]
    h_ref[...] = out.astype(h_ref.dtype)


def multi_head_attention(x_q, x_k, x_v, params, *, num_heads: int):
    """x_q/x_k/x_v: (B, S, d_model) float32.  Returns (H, A) like the module."""
    B, S, D = x_q.shape
    assert D % num_heads == 0
    d_k = D // num_heads
    scale = 1.0 / math.sqrt(d_k)

    # Tiny shapes: collapse the batch grid into a single step.
    block_b = B
    assert B % block_b == 0
    grid = (B // block_b,)
    rows_per_block = block_b * S

    # nn.Linear stores weight as (out, in); use transposed (in, out).
    # Build the block-diagonal packed QKV weight with the softmax scale
    # folded into the W_q block, then cast MXU operands to bf16 so the DMA
    # also moves bf16 bytes.
    zero = jnp.zeros((D, D), jnp.float32)
    w_qkv = jnp.block([
        [params["W_q"].T * scale, zero, zero],
        [zero, params["W_k"].T, zero],
        [zero, zero, params["W_v"].T],
    ]).astype(jnp.bfloat16)                                      # (3D, 3D)
    wh_t = params["W_h"].T.astype(jnp.bfloat16)                  # (D, D)
    bh = params["b_h"].reshape(1, D).astype(jnp.float32)

    # Pack activations along lanes: (B*S, 3D) = [X_q | X_k | X_v].
    x_packed = jnp.concatenate(
        [x_q.reshape(B * S, D), x_k.reshape(B * S, D), x_v.reshape(B * S, D)],
        axis=-1).astype(jnp.bfloat16)

    kernel = functools.partial(
        _mha_kernel, num_heads=num_heads, d_k=d_k, seq_len=S,
        block_b=block_b, d_model=D)

    grid_spec = pltpu.PrefetchScalarGridSpec(
        num_scalar_prefetch=0,
        grid=grid,
        in_specs=[
            pl.BlockSpec((rows_per_block, 3 * D), lambda i: (i, 0)),  # packed X
            pl.BlockSpec((3 * D, 3 * D), lambda i: (0, 0)),           # packed W_qkv
            pl.BlockSpec((D, D), lambda i: (0, 0)),                   # W_h^T
            pl.BlockSpec((1, D), lambda i: (0, 0)),                   # b_h
        ],
        out_specs=[
            pl.BlockSpec((rows_per_block, D), lambda i: (i, 0)),               # H
            pl.BlockSpec((block_b, num_heads, S, S), lambda i: (i, 0, 0, 0)),  # A
        ],
        scratch_shapes=[pltpu.VMEM((rows_per_block, D), jnp.float32)],
    )

    H_flat, A = pl.pallas_call(
        kernel,
        grid_spec=grid_spec,
        out_shape=(
            jax.ShapeDtypeStruct((B * S, D), jnp.float32),
            jax.ShapeDtypeStruct((B, num_heads, S, S), jnp.float32),
        ),
        compiler_params=pltpu.CompilerParams(
            dimension_semantics=("parallel",)),
    )(x_packed, w_qkv, wh_t, bh)

    return H_flat.reshape(B, S, D), A


def _reference(x_q, x_k, x_v, params, *, num_heads: int):
    """Pure-JAX f32 reference mirroring the PyTorch forward, for validation."""
    B, S, D = x_q.shape
    d_k = D // num_heads

    def split(x):
        return x.reshape(B, S, num_heads, d_k).transpose(0, 2, 1, 3)

    Q = split(x_q @ params["W_q"].T)
    K = split(x_k @ params["W_k"].T)
    V = split(x_v @ params["W_v"].T)
    scores = jnp.einsum("bhqd,bhkd->bhqk", Q / math.sqrt(d_k), K)
    A = jax.nn.softmax(scores, axis=-1)
    Hh = jnp.einsum("bhqk,bhkd->bhqd", A, V)
    H_cat = Hh.transpose(0, 2, 1, 3).reshape(B, S, D)
    H = H_cat @ params["W_h"].T + params["b_h"]
    return H, A


if __name__ == "__main__":
    B, S, D = 2, 8, 32
    num_heads = 4

    key = jax.random.PRNGKey(0)
    keys = jax.random.split(key, 8)
    # Deterministic synthetic parameters (nn.Linear-style (out, in) weights).
    params = {
        "W_q": jax.random.normal(keys[0], (D, D), jnp.float32) * 0.1,
        "W_k": jax.random.normal(keys[1], (D, D), jnp.float32) * 0.1,
        "W_v": jax.random.normal(keys[2], (D, D), jnp.float32) * 0.1,
        "W_h": jax.random.normal(keys[3], (D, D), jnp.float32) * 0.1,
        "b_h": jax.random.normal(keys[4], (D,), jnp.float32) * 0.1,
    }

    x_q = jax.random.normal(keys[5], (B, S, D), jnp.float32)
    x_k = jax.random.normal(keys[6], (B, S, D), jnp.float32)
    x_v = jax.random.normal(keys[7], (B, S, D), jnp.float32)

    H, A = multi_head_attention(x_q, x_k, x_v, params, num_heads=num_heads)
    jax.block_until_ready((H, A))

    H_ref, A_ref = _reference(x_q, x_k, x_v, params, num_heads=num_heads)
    # bf16 matmul operands (f32 accumulation) -> loosen tolerances vs f32 ref.
    assert jnp.allclose(H, H_ref, atol=3e-2, rtol=3e-2), "H mismatch"
    assert jnp.allclose(A, A_ref, atol=2e-2, rtol=2e-2), "A mismatch"

    print("KERNEL_OK")
</pallas_src>

<mosaic_0001>
module attributes {stable_mosaic.version = 11 : i64} {
  func.func @_mha_kernel(%arg0: i32, %arg1: memref<16x96xbf16, #tpu.memory_space<vmem>>, %arg2: memref<96x96xbf16, #tpu.memory_space<vmem>>, %arg3: memref<32x32xbf16, #tpu.memory_space<vmem>>, %arg4: memref<1x32xf32, #tpu.memory_space<vmem>>, %arg5: memref<16x32xf32, #tpu.memory_space<vmem>>, %arg6: memref<2x4x8x8xf32, #tpu.memory_space<vmem>>, %arg7: memref<16x32xf32, #tpu.memory_space<vmem>>) attributes {dimension_semantics = [#tpu.dimension_semantics<parallel>], iteration_bounds = array<i64: 1>, scalar_prefetch = 0 : i64, scratch_operands = 1 : i64, tpu.core_type = #tpu.core_type<tc>, window_params = [{transform_indices = @transform_0, window_bounds = array<i64: 16, 96>}, {pipeline_mode = #tpu.pipeline_mode<synchronous>, transform_indices = @transform_1, window_bounds = array<i64: 96, 96>}, {pipeline_mode = #tpu.pipeline_mode<synchronous>, transform_indices = @transform_2, window_bounds = array<i64: 32, 32>}, {pipeline_mode = #tpu.pipeline_mode<synchronous>, transform_indices = @transform_3, window_bounds = array<i64: 1, 32>}, {transform_indices = @transform_4, window_bounds = array<i64: 16, 32>}, {transform_indices = @transform_5, window_bounds = array<i64: 2, 4, 8, 8>}]} {
    %c0 = arith.constant 0 : index
    %c0_0 = arith.constant 0 : index
    %0 = vector.load %arg1[%c0, %c0_0] : memref<16x96xbf16, #tpu.memory_space<vmem>>, vector<16x96xbf16>
    %c0_1 = arith.constant 0 : index
    %c0_2 = arith.constant 0 : index
    %1 = vector.load %arg2[%c0_1, %c0_2] : memref<96x96xbf16, #tpu.memory_space<vmem>>, vector<96x96xbf16>
    %cst = arith.constant dense<0.000000e+00> : vector<16x96xf32>
    %2 = tpu.matmul %0, %1, %cst {dimension_numbers = #tpu.dot_dimension_numbers<[1], [0], [0], [1], [0, 0, 1, 1], [], []>} : vector<16x96xbf16>, vector<96x96xbf16>, vector<16x96xf32> -> vector<16x96xf32>
    %3 = arith.truncf %2 : vector<16x96xf32> to vector<16x96xbf16>
    %4 = vector.extract_strided_slice %3 {offsets = [0, 0], sizes = [8, 8], strides = [1, 1]} : vector<16x96xbf16> to vector<8x8xbf16>
    %5 = vector.extract_strided_slice %3 {offsets = [0, 32], sizes = [8, 8], strides = [1, 1]} : vector<16x96xbf16> to vector<8x8xbf16>
    %6 = vector.extract_strided_slice %3 {offsets = [0, 64], sizes = [8, 8], strides = [1, 1]} : vector<16x96xbf16> to vector<8x8xbf16>
    %cst_3 = arith.constant dense<0.000000e+00> : vector<8x8xf32>
    %7 = tpu.matmul %4, %5, %cst_3 {dimension_numbers = #tpu.dot_dimension_numbers<[1], [1], [0], [0], [0, 0, 1, 0], [], []>} : vector<8x8xbf16>, vector<8x8xbf16>, vector<8x8xf32> -> vector<8x8xf32>
    %cst_4 = arith.constant dense<0xFF800000> : vector<8xf32>
    %8 = vector.multi_reduction <maximumf>, %7, %cst_4 [1] : vector<8x8xf32> to vector<8xf32>
    %9 = vector.shape_cast %8 : vector<8xf32> to vector<8x1xf32>
    %10 = vector.broadcast %9 : vector<8x1xf32> to vector<8x8xf32>
    %11 = arith.subf %7, %10 : vector<8x8xf32>
    %12 = math.exp %11 : vector<8x8xf32>
    %cst_5 = arith.constant dense<0.000000e+00> : vector<8xf32>
    %13 = vector.multi_reduction <add>, %12, %cst_5 [1] : vector<8x8xf32> to vector<8xf32>
    %14 = vector.shape_cast %13 : vector<8xf32> to vector<8x1xf32>
    %15 = tpu.reciprocal %14 {approx = true} : vector<8x1xf32> -> vector<8x1xf32>
    %16 = vector.broadcast %15 : vector<8x1xf32> to vector<8x8xf32>
    %17 = arith.mulf %12, %16 : vector<8x8xf32>
    %c0_6 = arith.constant 0 : index
    %c0_7 = arith.constant 0 : index
    %c0_8 = arith.constant 0 : index
    %c0_9 = arith.constant 0 : index
    %18 = vector.load %arg6[%c0_6, %c0_7, %c0_8, %c0_9] : memref<2x4x8x8xf32, #tpu.memory_space<vmem>>, vector<1x1x8x8xf32>
    %19 = vector.shape_cast %18 : vector<1x1x8x8xf32> to vector<8x8xf32>
    %20 = vector.shape_cast %17 : vector<8x8xf32> to vector<1x1x8x8xf32>
    tpu.vector_store %arg6[%c0_6, %c0_7, %c0_8, %c0_9], %20 {strides = array<i32>} : memref<2x4x8x8xf32, #tpu.memory_space<vmem>>, vector<1x1x8x8xf32>,
    %21 = arith.truncf %17 : vector<8x8xf32> to vector<8x8xbf16>
    %cst_10 = arith.constant dense<0.000000e+00> : vector<8x8xf32>
    %22 = tpu.matmul %21, %6, %cst_10 {dimension_numbers = #tpu.dot_dimension_numbers<[1], [0], [0], [1], [0, 0, 1, 1], [], []>} : vector<8x8xbf16>, vector<8x8xbf16>, vector<8x8xf32> -> vector<8x8xf32>
    %c0_11 = arith.constant 0 : index
    %c0_12 = arith.constant 0 : index
    %23 = vector.load %arg7[%c0_11, %c0_12] : memref<16x32xf32, #tpu.memory_space<vmem>>, vector<8x8xf32>
    tpu.vector_store %arg7[%c0_11, %c0_12], %22 {strides = array<i32>} : memref<16x32xf32, #tpu.memory_space<vmem>>, vector<8x8xf32>,
    %24 = vector.extract_strided_slice %3 {offsets = [0, 8], sizes = [8, 8], strides = [1, 1]} : vector<16x96xbf16> to vector<8x8xbf16>
    %25 = vector.extract_strided_slice %3 {offsets = [0, 40], sizes = [8, 8], strides = [1, 1]} : vector<16x96xbf16> to vector<8x8xbf16>
    %26 = vector.extract_strided_slice %3 {offsets = [0, 72], sizes = [8, 8], strides = [1, 1]} : vector<16x96xbf16> to vector<8x8xbf16>
    %cst_13 = arith.constant dense<0.000000e+00> : vector<8x8xf32>
    %27 = tpu.matmul %24, %25, %cst_13 {dimension_numbers = #tpu.dot_dimension_numbers<[1], [1], [0], [0], [0, 0, 1, 0], [], []>} : vector<8x8xbf16>, vector<8x8xbf16>, vector<8x8xf32> -> vector<8x8xf32>
    %cst_14 = arith.constant dense<0xFF800000> : vector<8xf32>
    %28 = vector.multi_reduction <maximumf>, %27, %cst_14 [1] : vector<8x8xf32> to vector<8xf32>
    %29 = vector.shape_cast %28 : vector<8xf32> to vector<8x1xf32>
    %30 = vector.broadcast %29 : vector<8x1xf32> to vector<8x8xf32>
    %31 = arith.subf %27, %30 : vector<8x8xf32>
    %32 = math.exp %31 : vector<8x8xf32>
    %cst_15 = arith.constant dense<0.000000e+00> : vector<8xf32>
    %33 = vector.multi_reduction <add>, %32, %cst_15 [1] : vector<8x8xf32> to vector<8xf32>
    %34 = vector.shape_cast %33 : vector<8xf32> to vector<8x1xf32>
    %35 = tpu.reciprocal %34 {approx = true} : vector<8x1xf32> -> vector<8x1xf32>
    %36 = vector.broadcast %35 : vector<8x1xf32> to vector<8x8xf32>
    %37 = arith.mulf %32, %36 : vector<8x8xf32>
    %c0_16 = arith.constant 0 : index
    %c1 = arith.constant 1 : index
    %c0_17 = arith.constant 0 : index
    %c0_18 = arith.constant 0 : index
    %38 = vector.load %arg6[%c0_16, %c1, %c0_17, %c0_18] : memref<2x4x8x8xf32, #tpu.memory_space<vmem>>, vector<1x1x8x8xf32>
    %39 = vector.shape_cast %38 : vector<1x1x8x8xf32> to vector<8x8xf32>
    %40 = vector.shape_cast %37 : vector<8x8xf32> to vector<1x1x8x8xf32>
    tpu.vector_store %arg6[%c0_16, %c1, %c0_17, %c0_18], %40 {strides = array<i32>} : memref<2x4x8x8xf32, #tpu.memory_space<vmem>>, vector<1x1x8x8xf32>,
    %41 = arith.truncf %37 : vector<8x8xf32> to vector<8x8xbf16>
    %cst_19 = arith.constant dense<0.000000e+00> : vector<8x8xf32>
    %42 = tpu.matmul %41, %26, %cst_19 {dimension_numbers = #tpu.dot_dimension_numbers<[1], [0], [0], [1], [0, 0, 1, 1], [], []>} : vector<8x8xbf16>, vector<8x8xbf16>, vector<8x8xf32> -> vector<8x8xf32>
    %c0_20 = arith.constant 0 : index
    %c8 = arith.constant 8 : index
    %43 = vector.load %arg7[%c0_20, %c8] : memref<16x32xf32, #tpu.memory_space<vmem>>, vector<8x8xf32>
    tpu.vector_store %arg7[%c0_20, %c8], %42 {strides = array<i32>} : memref<16x32xf32, #tpu.memory_space<vmem>>, vector<8x8xf32>,
    %44 = vector.extract_strided_slice %3 {offsets = [0, 16], sizes = [8, 8], strides = [1, 1]} : vector<16x96xbf16> to vector<8x8xbf16>
    %45 = vector.extract_strided_slice %3 {offsets = [0, 48], sizes = [8, 8], strides = [1, 1]} : vector<16x96xbf16> to vector<8x8xbf16>
    %46 = vector.extract_strided_slice %3 {offsets = [0, 80], sizes = [8, 8], strides = [1, 1]} : vector<16x96xbf16> to vector<8x8xbf16>
    %cst_21 = arith.constant dense<0.000000e+00> : vector<8x8xf32>
    %47 = tpu.matmul %44, %45, %cst_21 {dimension_numbers = #tpu.dot_dimension_numbers<[1], [1], [0], [0], [0, 0, 1, 0], [], []>} : vector<8x8xbf16>, vector<8x8xbf16>, vector<8x8xf32> -> vector<8x8xf32>
    %cst_22 = arith.constant dense<0xFF800000> : vector<8xf32>
    %48 = vector.multi_reduction <maximumf>, %47, %cst_22 [1] : vector<8x8xf32> to vector<8xf32>
    %49 = vector.shape_cast %48 : vector<8xf32> to vector<8x1xf32>
    %50 = vector.broadcast %49 : vector<8x1xf32> to vector<8x8xf32>
    %51 = arith.subf %47, %50 : vector<8x8xf32>
    %52 = math.exp %51 : vector<8x8xf32>
    %cst_23 = arith.constant dense<0.000000e+00> : vector<8xf32>
    %53 = vector.multi_reduction <add>, %52, %cst_23 [1] : vector<8x8xf32> to vector<8xf32>
    %54 = vector.shape_cast %53 : vector<8xf32> to vector<8x1xf32>
    %55 = tpu.reciprocal %54 {approx = true} : vector<8x1xf32> -> vector<8x1xf32>
    %56 = vector.broadcast %55 : vector<8x1xf32> to vector<8x8xf32>
    %57 = arith.mulf %52, %56 : vector<8x8xf32>
    %c0_24 = arith.constant 0 : index
    %c2 = arith.constant 2 : index
    %c0_25 = arith.constant 0 : index
    %c0_26 = arith.constant 0 : index
    %58 = vector.load %arg6[%c0_24, %c2, %c0_25, %c0_26] : memref<2x4x8x8xf32, #tpu.memory_space<vmem>>, vector<1x1x8x8xf32>
    %59 = vector.shape_cast %58 : vector<1x1x8x8xf32> to vector<8x8xf32>
    %60 = vector.shape_cast %57 : vector<8x8xf32> to vector<1x1x8x8xf32>
    tpu.vector_store %arg6[%c0_24, %c2, %c0_25, %c0_26], %60 {strides = array<i32>} : memref<2x4x8x8xf32, #tpu.memory_space<vmem>>, vector<1x1x8x8xf32>,
    %61 = arith.truncf %57 : vector<8x8xf32> to vector<8x8xbf16>
    %cst_27 = arith.constant dense<0.000000e+00> : vector<8x8xf32>
    %62 = tpu.matmul %61, %46, %cst_27 {dimension_numbers = #tpu.dot_dimension_numbers<[1], [0], [0], [1], [0, 0, 1, 1], [], []>} : vector<8x8xbf16>, vector<8x8xbf16>, vector<8x8xf32> -> vector<8x8xf32>
    %c0_28 = arith.constant 0 : index
    %c16 = arith.constant 16 : index
    %63 = vector.load %arg7[%c0_28, %c16] : memref<16x32xf32, #tpu.memory_space<vmem>>, vector<8x8xf32>
    tpu.vector_store %arg7[%c0_28, %c16], %62 {strides = array<i32>} : memref<16x32xf32, #tpu.memory_space<vmem>>, vector<8x8xf32>,
    %64 = vector.extract_strided_slice %3 {offsets = [0, 24], sizes = [8, 8], strides = [1, 1]} : vector<16x96xbf16> to vector<8x8xbf16>
    %65 = vector.extract_strided_slice %3 {offsets = [0, 56], sizes = [8, 8], strides = [1, 1]} : vector<16x96xbf16> to vector<8x8xbf16>
    %66 = vector.extract_strided_slice %3 {offsets = [0, 88], sizes = [8, 8], strides = [1, 1]} : vector<16x96xbf16> to vector<8x8xbf16>
    %cst_29 = arith.constant dense<0.000000e+00> : vector<8x8xf32>
    %67 = tpu.matmul %64, %65, %cst_29 {dimension_numbers = #tpu.dot_dimension_numbers<[1], [1], [0], [0], [0, 0, 1, 0], [], []>} : vector<8x8xbf16>, vector<8x8xbf16>, vector<8x8xf32> -> vector<8x8xf32>
    %cst_30 = arith.constant dense<0xFF800000> : vector<8xf32>
    %68 = vector.multi_reduction <maximumf>, %67, %cst_30 [1] : vector<8x8xf32> to vector<8xf32>
    %69 = vector.shape_cast %68 : vector<8xf32> to vector<8x1xf32>
    %70 = vector.broadcast %69 : vector<8x1xf32> to vector<8x8xf32>
    %71 = arith.subf %67, %70 : vector<8x8xf32>
    %72 = math.exp %71 : vector<8x8xf32>
    %cst_31 = arith.constant dense<0.000000e+00> : vector<8xf32>
    %73 = vector.multi_reduction <add>, %72, %cst_31 [1] : vector<8x8xf32> to vector<8xf32>
    %74 = vector.shape_cast %73 : vector<8xf32> to vector<8x1xf32>
    %75 = tpu.reciprocal %74 {approx = true} : vector<8x1xf32> -> vector<8x1xf32>
    %76 = vector.broadcast %75 : vector<8x1xf32> to vector<8x8xf32>
    %77 = arith.mulf %72, %76 : vector<8x8xf32>
    %c0_32 = arith.constant 0 : index
    %c3 = arith.constant 3 : index
    %c0_33 = arith.constant 0 : index
    %c0_34 = arith.constant 0 : index
    %78 = vector.load %arg6[%c0_32, %c3, %c0_33, %c0_34] : memref<2x4x8x8xf32, #tpu.memory_space<vmem>>, vector<1x1x8x8xf32>
    %79 = vector.shape_cast %78 : vector<1x1x8x8xf32> to vector<8x8xf32>
    %80 = vector.shape_cast %77 : vector<8x8xf32> to vector<1x1x8x8xf32>
    tpu.vector_store %arg6[%c0_32, %c3, %c0_33, %c0_34], %80 {strides = array<i32>} : memref<2x4x8x8xf32, #tpu.memory_space<vmem>>, vector<1x1x8x8xf32>,
    %81 = arith.truncf %77 : vector<8x8xf32> to vector<8x8xbf16>
    %cst_35 = arith.constant dense<0.000000e+00> : vector<8x8xf32>
    %82 = tpu.matmul %81, %66, %cst_35 {dimension_numbers = #tpu.dot_dimension_numbers<[1], [0], [0], [1], [0, 0, 1, 1], [], []>} : vector<8x8xbf16>, vector<8x8xbf16>, vector<8x8xf32> -> vector<8x8xf32>
    %c0_36 = arith.constant 0 : index
    %c24 = arith.constant 24 : index
    %83 = vector.load %arg7[%c0_36, %c24] : memref<16x32xf32, #tpu.memory_space<vmem>>, vector<8x8xf32>
    tpu.vector_store %arg7[%c0_36, %c24], %82 {strides = array<i32>} : memref<16x32xf32, #tpu.memory_space<vmem>>, vector<8x8xf32>,
    %84 = vector.extract_strided_slice %3 {offsets = [8, 0], sizes = [8, 8], strides = [1, 1]} : vector<16x96xbf16> to vector<8x8xbf16>
    %85 = vector.extract_strided_slice %3 {offsets = [8, 32], sizes = [8, 8], strides = [1, 1]} : vector<16x96xbf16> to vector<8x8xbf16>
    %86 = vector.extract_strided_slice %3 {offsets = [8, 64], sizes = [8, 8], strides = [1, 1]} : vector<16x96xbf16> to vector<8x8xbf16>
    %cst_37 = arith.constant dense<0.000000e+00> : vector<8x8xf32>
    %87 = tpu.matmul %84, %85, %cst_37 {dimension_numbers = #tpu.dot_dimension_numbers<[1], [1], [0], [0], [0, 0, 1, 0], [], []>} : vector<8x8xbf16>, vector<8x8xbf16>, vector<8x8xf32> -> vector<8x8xf32>
    %cst_38 = arith.constant dense<0xFF800000> : vector<8xf32>
    %88 = vector.multi_reduction <maximumf>, %87, %cst_38 [1] : vector<8x8xf32> to vector<8xf32>
    %89 = vector.shape_cast %88 : vector<8xf32> to vector<8x1xf32>
    %90 = vector.broadcast %89 : vector<8x1xf32> to vector<8x8xf32>
    %91 = arith.subf %87, %90 : vector<8x8xf32>
    %92 = math.exp %91 : vector<8x8xf32>
    %cst_39 = arith.constant dense<0.000000e+00> : vector<8xf32>
    %93 = vector.multi_reduction <add>, %92, %cst_39 [1] : vector<8x8xf32> to vector<8xf32>
    %94 = vector.shape_cast %93 : vector<8xf32> to vector<8x1xf32>
    %95 = tpu.reciprocal %94 {approx = true} : vector<8x1xf32> -> vector<8x1xf32>
    %96 = vector.broadcast %95 : vector<8x1xf32> to vector<8x8xf32>
    %97 = arith.mulf %92, %96 : vector<8x8xf32>
    %c1_40 = arith.constant 1 : index
    %c0_41 = arith.constant 0 : index
    %c0_42 = arith.constant 0 : index
    %c0_43 = arith.constant 0 : index
    %98 = vector.load %arg6[%c1_40, %c0_41, %c0_42, %c0_43] : memref<2x4x8x8xf32, #tpu.memory_space<vmem>>, vector<1x1x8x8xf32>
    %99 = vector.shape_cast %98 : vector<1x1x8x8xf32> to vector<8x8xf32>
    %100 = vector.shape_cast %97 : vector<8x8xf32> to vector<1x1x8x8xf32>
    tpu.vector_store %arg6[%c1_40, %c0_41, %c0_42, %c0_43], %100 {strides = array<i32>} : memref<2x4x8x8xf32, #tpu.memory_space<vmem>>, vector<1x1x8x8xf32>,
    %101 = arith.truncf %97 : vector<8x8xf32> to vector<8x8xbf16>
    %cst_44 = arith.constant dense<0.000000e+00> : vector<8x8xf32>
    %102 = tpu.matmul %101, %86, %cst_44 {dimension_numbers = #tpu.dot_dimension_numbers<[1], [0], [0], [1], [0, 0, 1, 1], [], []>} : vector<8x8xbf16>, vector<8x8xbf16>, vector<8x8xf32> -> vector<8x8xf32>
    %c8_45 = arith.constant 8 : index
    %c0_46 = arith.constant 0 : index
    %103 = vector.load %arg7[%c8_45, %c0_46] : memref<16x32xf32, #tpu.memory_space<vmem>>, vector<8x8xf32>
    tpu.vector_store %arg7[%c8_45, %c0_46], %102 {strides = array<i32>} : memref<16x32xf32, #tpu.memory_space<vmem>>, vector<8x8xf32>,
    %104 = vector.extract_strided_slice %3 {offsets = [8, 8], sizes = [8, 8], strides = [1, 1]} : vector<16x96xbf16> to vector<8x8xbf16>
    %105 = vector.extract_strided_slice %3 {offsets = [8, 40], sizes = [8, 8], strides = [1, 1]} : vector<16x96xbf16> to vector<8x8xbf16>
    %106 = vector.extract_strided_slice %3 {offsets = [8, 72], sizes = [8, 8], strides = [1, 1]} : vector<16x96xbf16> to vector<8x8xbf16>
    %cst_47 = arith.constant dense<0.000000e+00> : vector<8x8xf32>
    %107 = tpu.matmul %104, %105, %cst_47 {dimension_numbers = #tpu.dot_dimension_numbers<[1], [1], [0], [0], [0, 0, 1, 0], [], []>} : vector<8x8xbf16>, vector<8x8xbf16>, vector<8x8xf32> -> vector<8x8xf32>
    %cst_48 = arith.constant dense<0xFF800000> : vector<8xf32>
    %108 = vector.multi_reduction <maximumf>, %107, %cst_48 [1] : vector<8x8xf32> to vector<8xf32>
    %109 = vector.shape_cast %108 : vector<8xf32> to vector<8x1xf32>
    %110 = vector.broadcast %109 : vector<8x1xf32> to vector<8x8xf32>
    %111 = arith.subf %107, %110 : vector<8x8xf32>
    %112 = math.exp %111 : vector<8x8xf32>
    %cst_49 = arith.constant dense<0.000000e+00> : vector<8xf32>
    %113 = vector.multi_reduction <add>, %112, %cst_49 [1] : vector<8x8xf32> to vector<8xf32>
    %114 = vector.shape_cast %113 : vector<8xf32> to vector<8x1xf32>
    %115 = tpu.reciprocal %114 {approx = true} : vector<8x1xf32> -> vector<8x1xf32>
    %116 = vector.broadcast %115 : vector<8x1xf32> to vector<8x8xf32>
    %117 = arith.mulf %112, %116 : vector<8x8xf32>
    %c1_50 = arith.constant 1 : index
    %c1_51 = arith.constant 1 : index
    %c0_52 = arith.constant 0 : index
    %c0_53 = arith.constant 0 : index
    %118 = vector.load %arg6[%c1_50, %c1_51, %c0_52, %c0_53] : memref<2x4x8x8xf32, #tpu.memory_space<vmem>>, vector<1x1x8x8xf32>
    %119 = vector.shape_cast %118 : vector<1x1x8x8xf32> to vector<8x8xf32>
    %120 = vector.shape_cast %117 : vector<8x8xf32> to vector<1x1x8x8xf32>
    tpu.vector_store %arg6[%c1_50, %c1_51, %c0_52, %c0_53], %120 {strides = array<i32>} : memref<2x4x8x8xf32, #tpu.memory_space<vmem>>, vector<1x1x8x8xf32>,
    %121 = arith.truncf %117 : vector<8x8xf32> to vector<8x8xbf16>
    %cst_54 = arith.constant dense<0.000000e+00> : vector<8x8xf32>
    %122 = tpu.matmul %121, %106, %cst_54 {dimension_numbers = #tpu.dot_dimension_numbers<[1], [0], [0], [1], [0, 0, 1, 1], [], []>} : vector<8x8xbf16>, vector<8x8xbf16>, vector<8x8xf32> -> vector<8x8xf32>
    %c8_55 = arith.constant 8 : index
    %c8_56 = arith.constant 8 : index
    %123 = vector.load %arg7[%c8_55, %c8_56] : memref<16x32xf32, #tpu.memory_space<vmem>>, vector<8x8xf32>
    tpu.vector_store %arg7[%c8_55, %c8_56], %122 {strides = array<i32>} : memref<16x32xf32, #tpu.memory_space<vmem>>, vector<8x8xf32>,
    %124 = vector.extract_strided_slice %3 {offsets = [8, 16], sizes = [8, 8], strides = [1, 1]} : vector<16x96xbf16> to vector<8x8xbf16>
    %125 = vector.extract_strided_slice %3 {offsets = [8, 48], sizes = [8, 8], strides = [1, 1]} : vector<16x96xbf16> to vector<8x8xbf16>
    %126 = vector.extract_strided_slice %3 {offsets = [8, 80], sizes = [8, 8], strides = [1, 1]} : vector<16x96xbf16> to vector<8x8xbf16>
    %cst_57 = arith.constant dense<0.000000e+00> : vector<8x8xf32>
    %127 = tpu.matmul %124, %125, %cst_57 {dimension_numbers = #tpu.dot_dimension_numbers<[1], [1], [0], [0], [0, 0, 1, 0], [], []>} : vector<8x8xbf16>, vector<8x8xbf16>, vector<8x8xf32> -> vector<8x8xf32>
    %cst_58 = arith.constant dense<0xFF800000> : vector<8xf32>
    %128 = vector.multi_reduction <maximumf>, %127, %cst_58 [1] : vector<8x8xf32> to vector<8xf32>
    %129 = vector.shape_cast %128 : vector<8xf32> to vector<8x1xf32>
    %130 = vector.broadcast %129 : vector<8x1xf32> to vector<8x8xf32>
    %131 = arith.subf %127, %130 : vector<8x8xf32>
    %132 = math.exp %131 : vector<8x8xf32>
    %cst_59 = arith.constant dense<0.000000e+00> : vector<8xf32>
    %133 = vector.multi_reduction <add>, %132, %cst_59 [1] : vector<8x8xf32> to vector<8xf32>
    %134 = vector.shape_cast %133 : vector<8xf32> to vector<8x1xf32>
    %135 = tpu.reciprocal %134 {approx = true} : vector<8x1xf32> -> vector<8x1xf32>
    %136 = vector.broadcast %135 : vector<8x1xf32> to vector<8x8xf32>
    %137 = arith.mulf %132, %136 : vector<8x8xf32>
    %c1_60 = arith.constant 1 : index
    %c2_61 = arith.constant 2 : index
    %c0_62 = arith.constant 0 : index
    %c0_63 = arith.constant 0 : index
    %138 = vector.load %arg6[%c1_60, %c2_61, %c0_62, %c0_63] : memref<2x4x8x8xf32, #tpu.memory_space<vmem>>, vector<1x1x8x8xf32>
    %139 = vector.shape_cast %138 : vector<1x1x8x8xf32> to vector<8x8xf32>
    %140 = vector.shape_cast %137 : vector<8x8xf32> to vector<1x1x8x8xf32>
    tpu.vector_store %arg6[%c1_60, %c2_61, %c0_62, %c0_63], %140 {strides = array<i32>} : memref<2x4x8x8xf32, #tpu.memory_space<vmem>>, vector<1x1x8x8xf32>,
    %141 = arith.truncf %137 : vector<8x8xf32> to vector<8x8xbf16>
    %cst_64 = arith.constant dense<0.000000e+00> : vector<8x8xf32>
    %142 = tpu.matmul %141, %126, %cst_64 {dimension_numbers = #tpu.dot_dimension_numbers<[1], [0], [0], [1], [0, 0, 1, 1], [], []>} : vector<8x8xbf16>, vector<8x8xbf16>, vector<8x8xf32> -> vector<8x8xf32>
    %c8_65 = arith.constant 8 : index
    %c16_66 = arith.constant 16 : index
    %143 = vector.load %arg7[%c8_65, %c16_66] : memref<16x32xf32, #tpu.memory_space<vmem>>, vector<8x8xf32>
    tpu.vector_store %arg7[%c8_65, %c16_66], %142 {strides = array<i32>} : memref<16x32xf32, #tpu.memory_space<vmem>>, vector<8x8xf32>,
    %144 = vector.extract_strided_slice %3 {offsets = [8, 24], sizes = [8, 8], strides = [1, 1]} : vector<16x96xbf16> to vector<8x8xbf16>
    %145 = vector.extract_strided_slice %3 {offsets = [8, 56], sizes = [8, 8], strides = [1, 1]} : vector<16x96xbf16> to vector<8x8xbf16>
    %146 = vector.extract_strided_slice %3 {offsets = [8, 88], sizes = [8, 8], strides = [1, 1]} : vector<16x96xbf16> to vector<8x8xbf16>
    %cst_67 = arith.constant dense<0.000000e+00> : vector<8x8xf32>
    %147 = tpu.matmul %144, %145, %cst_67 {dimension_numbers = #tpu.dot_dimension_numbers<[1], [1], [0], [0], [0, 0, 1, 0], [], []>} : vector<8x8xbf16>, vector<8x8xbf16>, vector<8x8xf32> -> vector<8x8xf32>
    %cst_68 = arith.constant dense<0xFF800000> : vector<8xf32>
    %148 = vector.multi_reduction <maximumf>, %147, %cst_68 [1] : vector<8x8xf32> to vector<8xf32>
    %149 = vector.shape_cast %148 : vector<8xf32> to vector<8x1xf32>
    %150 = vector.broadcast %149 : vector<8x1xf32> to vector<8x8xf32>
    %151 = arith.subf %147, %150 : vector<8x8xf32>
    %152 = math.exp %151 : vector<8x8xf32>
    %cst_69 = arith.constant dense<0.000000e+00> : vector<8xf32>
    %153 = vector.multi_reduction <add>, %152, %cst_69 [1] : vector<8x8xf32> to vector<8xf32>
    %154 = vector.shape_cast %153 : vector<8xf32> to vector<8x1xf32>
    %155 = tpu.reciprocal %154 {approx = true} : vector<8x1xf32> -> vector<8x1xf32>
    %156 = vector.broadcast %155 : vector<8x1xf32> to vector<8x8xf32>
    %157 = arith.mulf %152, %156 : vector<8x8xf32>
    %c1_70 = arith.constant 1 : index
    %c3_71 = arith.constant 3 : index
    %c0_72 = arith.constant 0 : index
    %c0_73 = arith.constant 0 : index
    %158 = vector.load %arg6[%c1_70, %c3_71, %c0_72, %c0_73] : memref<2x4x8x8xf32, #tpu.memory_space<vmem>>, vector<1x1x8x8xf32>
    %159 = vector.shape_cast %158 : vector<1x1x8x8xf32> to vector<8x8xf32>
    %160 = vector.shape_cast %157 : vector<8x8xf32> to vector<1x1x8x8xf32>
    tpu.vector_store %arg6[%c1_70, %c3_71, %c0_72, %c0_73], %160 {strides = array<i32>} : memref<2x4x8x8xf32, #tpu.memory_space<vmem>>, vector<1x1x8x8xf32>,
    %161 = arith.truncf %157 : vector<8x8xf32> to vector<8x8xbf16>
    %cst_74 = arith.constant dense<0.000000e+00> : vector<8x8xf32>
    %162 = tpu.matmul %161, %146, %cst_74 {dimension_numbers = #tpu.dot_dimension_numbers<[1], [0], [0], [1], [0, 0, 1, 1], [], []>} : vector<8x8xbf16>, vector<8x8xbf16>, vector<8x8xf32> -> vector<8x8xf32>
    %c8_75 = arith.constant 8 : index
    %c24_76 = arith.constant 24 : index
    %163 = vector.load %arg7[%c8_75, %c24_76] : memref<16x32xf32, #tpu.memory_space<vmem>>, vector<8x8xf32>
    tpu.vector_store %arg7[%c8_75, %c24_76], %162 {strides = array<i32>} : memref<16x32xf32, #tpu.memory_space<vmem>>, vector<8x8xf32>,
    %c0_77 = arith.constant 0 : index
    %c0_78 = arith.constant 0 : index
    %164 = vector.load %arg7[%c0_77, %c0_78] : memref<16x32xf32, #tpu.memory_space<vmem>>, vector<16x32xf32>
    %165 = arith.truncf %164 : vector<16x32xf32> to vector<16x32xbf16>
    %c0_79 = arith.constant 0 : index
    %c0_80 = arith.constant 0 : index
    %166 = vector.load %arg3[%c0_79, %c0_80] : memref<32x32xbf16, #tpu.memory_space<vmem>>, vector<32x32xbf16>
    %cst_81 = arith.constant dense<0.000000e+00> : vector<16x32xf32>
    %167 = tpu.matmul %165, %166, %cst_81 {dimension_numbers = #tpu.dot_dimension_numbers<[1], [0], [0], [1], [0, 0, 1, 1], [], []>} : vector<16x32xbf16>, vector<32x32xbf16>, vector<16x32xf32> -> vector<16x32xf32>
    %c0_82 = arith.constant 0 : index
    %c0_83 = arith.constant 0 : index
    %168 = vector.load %arg4[%c0_82, %c0_83] : memref<1x32xf32, #tpu.memory_space<vmem>>, vector<1x32xf32>
    %169 = vector.broadcast %168 : vector<1x32xf32> to vector<16x32xf32>
    %170 = arith.addf %167, %169 : vector<16x32xf32>
    %c0_84 = arith.constant 0 : index
    %c0_85 = arith.constant 0 : index
    %171 = vector.load %arg5[%c0_84, %c0_85] : memref<16x32xf32, #tpu.memory_space<vmem>>, vector<16x32xf32>
    tpu.vector_store %arg5[%c0_84, %c0_85], %170 {strides = array<i32>} : memref<16x32xf32, #tpu.memory_space<vmem>>, vector<16x32xf32>,
    return
  }
  func.func @transform_0(%arg0: i32) -> (i32, i32) {
    %c0_i32 = arith.constant 0 : i32
    %c0_i32_0 = arith.constant 0 : i32
    return %arg0, %c0_i32 : i32, i32
  }
  func.func @transform_1(%arg0: i32) -> (i32, i32) {
    %c0_i32 = arith.constant 0 : i32
    %c0_i32_0 = arith.constant 0 : i32
    %c0_i32_1 = arith.constant 0 : i32
    return %c0_i32, %c0_i32_0 : i32, i32
  }
  func.func @transform_2(%arg0: i32) -> (i32, i32) {
    %c0_i32 = arith.constant 0 : i32
    %c0_i32_0 = arith.constant 0 : i32
    %c0_i32_1 = arith.constant 0 : i32
    return %c0_i32, %c0_i32_0 : i32, i32
  }
  func.func @transform_3(%arg0: i32) -> (i32, i32) {
    %c0_i32 = arith.constant 0 : i32
    %c0_i32_0 = arith.constant 0 : i32
    %c0_i32_1 = arith.constant 0 : i32
    return %c0_i32, %c0_i32_0 : i32, i32
  }
  func.func @transform_4(%arg0: i32) -> (i32, i32) {
    %c0_i32 = arith.constant 0 : i32
    %c0_i32_0 = arith.constant 0 : i32
    return %arg0, %c0_i32 : i32, i32
  }
  func.func @transform_5(%arg0: i32) -> (i32, i32, i32, i32) {
    %c0_i32 = arith.constant 0 : i32
    %c0_i32_0 = arith.constant 0 : i32
    %c0_i32_1 = arith.constant 0 : i32
    %c0_i32_2 = arith.constant 0 : i32
    return %arg0, %c0_i32, %c0_i32_0, %c0_i32_1 : i32, i32, i32, i32
  }
}

</mosaic_0001>

<bundles_post_ra>
// kernel: tpu_custom_call.1
= control target key start
LH: loop header
LB: loop body
LE: loop exit
PB: predicated region body
PF: predicated region fallthrough
CT: control target
= control target key end

     0   :  { %11 = vsyncpa [#allocation4], 0  ;;  %s1887_s0 = inlined_call_operand.hbm [shape: bf16[16,96], index: 0, kind: input, shape index: {}]   ;;  %s1888_s1 = inlined_call_operand.hbm [shape: bf16[96,96], index: 1, kind: input, shape index: {}]   ;;  %s1889_s2 = inlined_call_operand.hbm [shape: bf16[32,32], index: 2, kind: input, shape index: {}]   ;;  %s1890_s3 = inlined_call_operand.vmem [shape: f32[1,32], index: 3, kind: input, shape index: {}]   ;;  %s1891_s4 = inlined_call_operand.hbm [shape: f32[16,32], index: 4, kind: output, shape index: {0}]   ;;  %s1892_s5 = inlined_call_operand.hbm [shape: f32[2,4,8,8], index: 5, kind: output, shape index: {1}]  }
   0x1   :  { %12 = vsyncpa [#allocation7], 0 }
   0x2   :  { %13 = vsyncpa [#allocation5], 0 }
   0x3   :  { %14 = vsyncpa [#allocation11], 0  ;;  %s1573_s18 = smov [#allocation6]   ;;  %s1574_s20 = smov [#allocation3]  }
   0x4   :  { %s32_s19 = sshll.u32 %s1573_s18, 4  ;;  %s20_s21 = sshll.u32 %s1574_s20, 4  ;;  %s33_s19 = int_to_ptr.vmem [resolvable:$true] %s32_s19  ;;  %s1626_s21 = int_to_ptr.vmem [resolvable:$true] %s20_s21 }
   0x5   :  { %s1455_s24 = scalar_lea.hbm %s1888_s1, 768 }
   0x6   :  { %p1456_p0 = scmp.ne.s32.totalorder %s1888_s1, %s1455_s24  ;;  %p1459_p1 = scmp.lt.u32.totalorder %s1455_s24, %s1888_s1 }
   0x8   :  { %p1461_p2 = pnand %p1459_p1, %p1456_p0 }
   0xa   :  { %1464 = shalt.err (!%p1461_p2)
}
   0xb   :  { %s1465_s29 = scalar_lea.vmem %s33_s19, 768  ;;  %p1470_p4 = scmp.lt.s32.totalorder %s33_s19, %s33_s19 }
   0xc   :  { %p1466_p3 = scmp.ne.s32.totalorder %s33_s19, %s1465_s29  ;;  %p1471_p5 = scmp.lt.s32.totalorder %s1465_s29, %s1465_s29 }
   0xe   :  { %p1472_p6 = por %p1471_p5, %p1470_p4 }
  0x10   :  { %p1473_p7 = pnand %p1472_p6, %p1466_p3 }
  0x12   :  { %1476 = shalt.err (!%p1473_p7)
}
  0x13   :  { %s1575_s30 = smov 64   ;;  %s1576_s6 = smov 4  }
  0x14   :  { %38 = dma.hbm_to_vmem [thread:$0]  %s1888_s1, 768, %s33_s19, [#allocation7], %s1575_s30, %s1575_s30, %s1576_s6  }
  0x15   :  { %s1477_s11 = scalar_lea.hbm %s1887_s0, 128 }
  0x16   :  { %p1478_p8 = scmp.ne.s32.totalorder %s1887_s0, %s1477_s11  ;;  %p1481_p9 = scmp.lt.u32.totalorder %s1477_s11, %s1887_s0 }
  0x18   :  { %p1483_p10 = pnand %p1481_p9, %p1478_p8 }
  0x1a   :  { %1486 = shalt.err (!%p1483_p10)
}
  0x1b   :  { %s1487_s16 = scalar_lea.vmem %s1626_s21, 128  ;;  %p1492_p12 = scmp.lt.s32.totalorder %s1626_s21, %s1626_s21 }
  0x1c   :  { %p1488_p11 = scmp.ne.s32.totalorder %s1626_s21, %s1487_s16  ;;  %p1493_p13 = scmp.lt.s32.totalorder %s1487_s16, %s1487_s16 }
  0x1e   :  { %p1494_p0 = por %p1493_p13, %p1492_p12 }
  0x20   :  { %p1495_p1 = pnand %p1494_p0, %p1488_p11 }
  0x22   :  { %1498 = shalt.err (!%p1495_p1)
}
  0x23   :  { %26 = dma.hbm_to_vmem [thread:$0]  %s1887_s0, 128, %s1626_s21, [#allocation4], %s1575_s30, %s1575_s30, %s1576_s6  }
  0x24   :  { %s1577_s18 = smov [#allocation8]   ;;  %s1499_s23 = scalar_lea.hbm %s1889_s2, 256 }
  0x25   :  { %s44_s19 = sshll.u32 %s1577_s18, 4  ;;  %p1500_p2 = scmp.ne.s32.totalorder %s1889_s2, %s1499_s23  ;;  %s45_s19 = int_to_ptr.vmem [resolvable:$true] %s44_s19 }
  0x26   :  { %p1503_p3 = scmp.lt.u32.totalorder %s1499_s23, %s1889_s2 }
  0x28   :  { %p1505_p4 = pnand %p1503_p3, %p1500_p2 }
  0x2a   :  { %1508 = shalt.err (!%p1505_p4)
}
  0x2b   :  { %s1509_s28 = scalar_lea.vmem %s45_s19, 256  ;;  %p1514_p6 = scmp.lt.s32.totalorder %s45_s19, %s45_s19 }
  0x2c   :  { %p1510_p5 = scmp.ne.s32.totalorder %s45_s19, %s1509_s28  ;;  %p1515_p7 = scmp.lt.s32.totalorder %s1509_s28, %s1509_s28 }
  0x2e   :  { %p1516_p8 = por %p1515_p7, %p1514_p6 }
  0x30   :  { %p1517_p9 = pnand %p1516_p8, %p1510_p5 }
  0x32   :  { %1520 = shalt.err (!%p1517_p9)
}
  0x33   :  { %50 = dma.hbm_to_vmem [thread:$0]  %s1889_s2, 256, %s45_s19, [#allocation7], %s1575_s30, %s1575_s30, %s1576_s6  }
  0x34   :  { %1565 = dma.done.wait [#allocation4], 128  }
  0x35   :  { %1566 = vsyncadd [#allocation4], 4294967168 }
  0x36   :  { %1567 = dma.done.wait [#allocation7], 1024  }
  0x37   :  { %1568 = vsyncadd [#allocation7], 4294966272  ;;  %v1578_v0 = vmov 0.0   ;;  %vm1579_vm0 = vmmov 0   ;;  %v1414_v1 = vld [vmem:[#allocation6] sm:$0xff]   ;;  %v1415_v2 = vld [vmem:[#allocation6 + $0x8] sm:$0xff]  }
  0x38   :  { %1271 = vmatprep.subr.bf16.mxu0 %v1578_v0  ;;  %1283 = vmatprep.mubr.msk.bf16.mxu0 %vm1579_vm0, %v1578_v0  ;;  %v1416_v3 = vld [vmem:[#allocation6 + $0x10] sm:$0xff]   ;;  %v1417_v4 = vld [vmem:[#allocation6 + $0x18] sm:$0xff]   ;;  %v1418_v5 = vld [vmem:[#allocation6 + $0x20] sm:$0xff]   ;;  %vm118_vm1 = vcmask 785408   ;;  %s1580_s2 = smov 96   ;;  %s1581_s29 = smov 88  }
  0x39   :  { %1287 = vmatprep.subr.bf16.mxu1 %v1578_v0  ;;  %1289 = vmatprep.mubr.msk.bf16.mxu1 %vm1579_vm0, %v1578_v0  ;;  %v1419_v6 = vld [vmem:[#allocation6 + $0x28] sm:$0xff]   ;;  %v1420_v7 = vld [vmem:[#allocation3] sm:$0xff]   ;;  %vm167_vm2 = vcmask 64512   ;;  %vm232_vm3 = vcmask 1043456   ;;  %s1582_s6 = smov 72   ;;  %s1583_s7 = smov 112  }
  0x3a   :  { %1272 = vmatpush3.bf16.msra.mxu0 %v1414_v1  ;;  %s1584_s8 = smov 104   ;;  %s1585_s9 = smov 120   ;;  %vm393_vm4 = vcmask 130112   ;;  %vm511_vm5 = vcmask 195712   ;;  %vm629_vm6 = vcmask 261312   ;;  %vm1120_vm7 = vcmask 261120  }
  0x3b   :  { %1273 = vmatprep.subr.bf16.mxu0 %v1578_v0  ;;  %s1586_s10 = smov 80   ;;  %s1587_s11 = smov 56  }
  0x3c   :  { %s1588_s12 = smov 48   ;;  %s1589_s13 = smov 40  }
  0x3d   :  { %s1591_s14 = smov 16   ;;  %s1592_s15 = smov 24  }
  0x3e   :  { %1274 = vmatpush3.bf16.msra.mxu0 %v1415_v2  ;;  %s1593_s16 = smov [#allocation10]  }
  0x3f   :  { %1275 = vmatprep.subr.bf16.mxu0 %v1578_v0  ;;  %s1184_s1 = sshll.u32 %s1593_s16, 4  ;;  %s1185_s1 = int_to_ptr.vmem [resolvable:$true] %s1184_s1 }
  0x40   :  { %s1521_s17 = scalar_lea.vmem %s1185_s1, 1024  ;;  %p1526_p11 = scmp.lt.s32.totalorder %s1185_s1, %s1185_s1 }
  0x41   :  { %p1522_p10 = scmp.ne.s32.totalorder %s1185_s1, %s1521_s17  ;;  %p1527_p12 = scmp.lt.s32.totalorder %s1521_s17, %s1521_s17 }
  0x42   :  { %1276 = vmatpush3.bf16.msra.mxu0 %v1416_v3 }
  0x43   :  { %1277 = vmatprep.subr.bf16.mxu0 %v1578_v0  ;;  %p1528_p13 = por %p1527_p12, %p1526_p11 }
  0x45   :  { %p1529_p0 = pnand %p1528_p13, %p1522_p10 }
  0x46   :  { %1278 = vmatpush3.bf16.msra.mxu0 %v1417_v4 }
  0x47   :  { %1279 = vmatprep.subr.bf16.mxu0 %v1578_v0 }
  0x4a   :  { %1280 = vmatpush3.bf16.msra.mxu0 %v1418_v5 }
  0x4b   :  { %1281 = vmatprep.subr.bf16.mxu0 %v1578_v0 }
  0x4e   :  { %1282 = vmatpush3.bf16.msra.mxu0 %v1419_v6 }
  0x4f   :  { %1305 = vmatprep.subr.bf16.mxu0 %v1578_v0 }
  0x51   :  { %1284 = vmatmul.mubr.msk.bf16.vlgmr.msra.gmra.mrb[0].mxu0 %vm118_vm1, %v1420_v7 }
  0x52   :  { %1307 = vmatprep.mubr.msk.bf16.mxu0 %vm1579_vm0, %v1578_v0 }
 0x124   :  { %v156_v8 = vpop.f32.mrb[0].mxu0 }
 0x125   :  { %v1285_v9 = vpop.f32.mrb[1].mxu0 }
 0x126   :  { %v159_v10 = vpop.f32.mrb[2].mxu0 }
 0x127   :  { %v1692_v11 = vpack.c.bf16 %v159_v10, %v156_v8  ;;  %v1286_v12 = vpop.f32.mrb[3].mxu0 }
 0x129   :  { %227 = vrot.lane.b32.xlu1 %v1692_v11, %s1575_s30  ;;  %165 = vrot.lane.b32.xlu0 %v1692_v11, %s1580_s2  ;;  %v1711_v22 = vrot.slane %v1692_v11, 4 }
 0x12d   :  { %279 = vrot.lane.b32.xlu1 %v1692_v11, %s1581_s29 }
 0x19b   :  { %v166_v13 = vpop.permute.xlu0 %165  ;;  %v228_v15 = vpop.permute.xlu1 %227 }
 0x19c   :  { %v172_v14 = vsel %vm167_vm2, %v166_v13, 0  ;;  %v234_v16 = vsel %vm232_vm3, %v228_v15, 0 }
 0x19d   :  { %1288 = vmatpush3.bf16.xpose.msra.mxu1 %v172_v14 }
 0x19e   :  { %1293 = vmatprep.subr.bf16.mxu1 %v1578_v0 }
 0x19f   :  { %v280_v28 = vpop.permute.xlu1 %279 }
 0x1a0   :  { %v285_v34 = vsel %vm167_vm2, %v280_v28, 0 }
 0x1a4   :  { %1290 = vmatmul.mubr.msk.bf16.vlgmr.msra.gmra.mrb[0].mxu1 %vm167_vm2, %v1692_v11 }
 0x1a5   :  { %1294 = vmatpush3.bf16.msra.mxu1 %v234_v16  ;;  %1295 = vmatprep.mubr.msk.bf16.mxu1 %vm1579_vm0, %v1578_v0 }
 0x1a6   :  { %1299 = vmatprep.subr.bf16.mxu1 %v1578_v0 }
 0x277   :  { %v208_v17 = vpop.f32.mrb[0].mxu1 }
 0x278   :  { %v1291_v18 = vpop.f32.mrb[1].mxu1  ;;  %v214_v19 = vsel %vm167_vm2, %v208_v17, -inf }
 0x279   :  { %215 = vmax.xlane.f32.xlu0 %v214_v19  ;;  %v211_v20 = vpop.f32.mrb[2].mxu1 }
 0x27a   :  { %v1292_v21 = vpop.f32.mrb[3].mxu1 }
 0x28f   :  { %515 = vrot.lane.b32.xlu0 %v1692_v11, %s1582_s6 }
 0x293   :  { %860 = vrot.lane.b32.xlu0 %v1711_v22, %s1583_s7 }
 0x297   :  { %977 = vrot.lane.b32.xlu0 %v1711_v22, %s1584_s8 }
 0x306   :  { %v216_v23 = vpop.xlane.xlu0 %215 }
 0x307   :  { %v217_v24 = vsub.f32 %v208_v17, %v216_v23 }
 0x309   :  { %v218_v25 = vmul.f32 1.442695, %v217_v24 }
 0x30a   :  { %v516_v38 = vpop.permute.xlu0 %515 }
 0x30b   :  { %1423 = vpow2.f32 %v218_v25  ;;  %v521_v40 = vsel %vm167_vm2, %v516_v38, 0 }
 0x30e   :  { %v861_v49 = vpop.permute.xlu0 %860 }
 0x312   :  { %v978_v51 = vpop.permute.xlu0 %977 }
 0x315   :  { %v1424_v26 = vpop.eup %1423 }
 0x316   :  { %v220_v27 = vsel %vm167_vm2, %v1424_v26, 0.0 }
 0x317   :  { %221 = vadd.xlane.f32.xlu1 %v220_v27 }
 0x328   :  { %277 = vrot.lane.b32.xlu1 %v1692_v11, %s1585_s9 }
 0x32c   :  { %397 = vrot.lane.b32.xlu1 %v1692_v11, %s1586_s10 }
 0x330   :  { %395 = vrot.lane.b32.xlu1 %v1692_v11, %s1583_s7 }
 0x334   :  { %513 = vrot.lane.b32.xlu1 %v1692_v11, %s1584_s8 }
 0x338   :  { %632 = vrot.lane.b32.xlu1 %v1711_v22, %s1580_s2 }
 0x33c   :  { %745 = vrot.lane.b32.xlu1 %v1711_v22, %s1581_s29 }
 0x340   :  { %743 = vrot.lane.b32.xlu1 %v1711_v22, %s1585_s9 }
 0x344   :  { %862 = vrot.lane.b32.xlu1 %v1711_v22, %s1586_s10 }
 0x348   :  { %979 = vrot.lane.b32.xlu1 %v1711_v22, %s1582_s6 }
 0x3a4   :  { %v222_v29 = vpop.xlane.xlu1 %221 }
 0x3a5   :  { %1425 = vrcp.f32 %v222_v29 }
 0x3a8   :  { %v278_v31 = vpop.permute.xlu1 %277 }
 0x3ac   :  { %v398_v35 = vpop.permute.xlu1 %397 }
 0x3ad   :  { %v403_v37 = vsel %vm167_vm2, %v398_v35, 0 }
 0x3af   :  { %v1426_v30 = vpop.eup %1425 }
 0x3b0   :  { %v224_v32 = vmul.f32 %v1426_v30, %v1424_v26  ;;  %v396_v36 = vpop.permute.xlu1 %395 }
 0x3b2   :  { %225 = vst.msk [vmem:[#allocation10] sm:$0xff] %vm167_vm2, %v224_v32  ;;  %v226_v33 = vpack.c.bf16 %v224_v32, %v224_v32 }
 0x3b4   :  { %1296 = vmatmul.mubr.msk.bf16.vlgmr.msra.gmra.mrb[4].mxu1 %vm167_vm2, %v226_v33  ;;  %v514_v39 = vpop.permute.xlu1 %513 }
 0x3b5   :  { %1300 = vmatpush3.bf16.xpose.msra.mxu1 %v285_v34  ;;  %1301 = vmatprep.mubr.msk.bf16.mxu1 %vm1579_vm0, %v1578_v0 }
 0x3b6   :  { %1311 = vmatprep.subr.bf16.mxu1 %v1578_v0 }
 0x3b8   :  { %v633_v41 = vpop.permute.xlu1 %632 }
 0x3b9   :  { %v638_v42 = vsel %vm167_vm2, %v633_v41, 0 }
 0x3bc   :  { %1302 = vmatmul.mubr.msk.bf16.vlgmr.msra.gmra.mrb[8].mxu1 %vm167_vm2, %v278_v31  ;;  %v746_v43 = vpop.permute.xlu1 %745 }
 0x3bd   :  { %1312 = vmatpush3.bf16.xpose.msra.mxu1 %v403_v37  ;;  %1313 = vmatprep.mubr.msk.bf16.mxu1 %vm1579_vm0, %v1578_v0  ;;  %v751_v45 = vsel %vm167_vm2, %v746_v43, 0 }
 0x3be   :  { %1323 = vmatprep.subr.bf16.mxu1 %v1578_v0 }
 0x3c0   :  { %v744_v44 = vpop.permute.xlu1 %743 }
 0x3c4   :  { %1314 = vmatmul.mubr.msk.bf16.vlgmr.msra.gmra.mrb[12].mxu1 %vm167_vm2, %v396_v36  ;;  %v863_v46 = vpop.permute.xlu1 %862 }
 0x3c5   :  { %1324 = vmatpush3.bf16.xpose.msra.mxu1 %v521_v40  ;;  %1325 = vmatprep.mubr.msk.bf16.mxu1 %vm1579_vm0, %v1578_v0  ;;  %v868_v47 = vsel %vm167_vm2, %v863_v46, 0 }
 0x3c6   :  { %1335 = vmatprep.subr.bf16.mxu1 %v1578_v0 }
 0x3c8   :  { %v980_v48 = vpop.permute.xlu1 %979 }
 0x3c9   :  { %v985_v50 = vsel %vm167_vm2, %v980_v48, 0 }
 0x3cc   :  { %1326 = vmatmul.mubr.msk.bf16.vlgmr.msra.gmra.mrb[16].mxu1 %vm167_vm2, %v514_v39 }
 0x3cd   :  { %1336 = vmatpush3.bf16.xpose.msra.mxu1 %v638_v42  ;;  %1337 = vmatprep.mubr.msk.bf16.mxu1 %vm1579_vm0, %v1578_v0 }
 0x3ce   :  { %1347 = vmatprep.subr.bf16.mxu1 %v1578_v0 }
 0x3d4   :  { %1338 = vmatmul.mubr.msk.bf16.vlgmr.msra.gmra.mrb[20].mxu1 %vm167_vm2, %v1711_v22 }
 0x3d5   :  { %1348 = vmatpush3.bf16.xpose.msra.mxu1 %v751_v45  ;;  %1349 = vmatprep.mubr.msk.bf16.mxu1 %vm1579_vm0, %v1578_v0 }
 0x3d6   :  { %1359 = vmatprep.subr.bf16.mxu1 %v1578_v0 }
 0x3dc   :  { %1350 = vmatmul.mubr.msk.bf16.vlgmr.msra.gmra.mrb[24].mxu1 %vm167_vm2, %v744_v44 }
 0x3dd   :  { %1360 = vmatpush3.bf16.xpose.msra.mxu1 %v868_v47  ;;  %1361 = vmatprep.mubr.msk.bf16.mxu1 %vm1579_vm0, %v1578_v0 }
 0x3de   :  { %1371 = vmatprep.subr.bf16.mxu1 %v1578_v0 }
 0x3e4   :  { %1362 = vmatmul.mubr.msk.bf16.vlgmr.msra.gmra.mrb[28].mxu1 %vm167_vm2, %v861_v49 }
 0x3e5   :  { %1372 = vmatpush3.bf16.xpose.msra.mxu1 %v985_v50  ;;  %1373 = vmatprep.mubr.msk.bf16.mxu1 %vm1579_vm0, %v1578_v0 }
 0x3e6   :  { %1383 = vmatprep.subr.bf16.mxu1 %v1578_v0 }
 0x3ec   :  { %1374 = vmatmul.mubr.msk.bf16.vlgmr.msra.gmra.mrb[32].mxu1 %vm167_vm2, %v978_v51 }
 0x3ed   :  { %1387 = vmatprep.mubr.msk.bf16.mxu1 %vm1579_vm0, %v1578_v0 }
 0x487   :  { %v270_v52 = vpop.f32.mrb[4].mxu1 }
 0x488   :  { %276 = vst.msk [vmem:[#allocation2] sm:$0xff] %vm167_vm2, %v270_v52  ;;  %v1297_v53 = vpop.f32.mrb[5].mxu1 }
 0x489   :  { %v273_v54 = vpop.f32.mrb[6].mxu1 }
 0x48a   :  { %v1298_v55 = vpop.f32.mrb[7].mxu1 }
 0x48f   :  { %v321_v56 = vpop.f32.mrb[8].mxu1 }
 0x490   :  { %v1303_v57 = vpop.f32.mrb[9].mxu1  ;;  %v327_v58 = vsel %vm167_vm2, %v321_v56, -inf }
 0x491   :  { %v324_v59 = vpop.f32.mrb[10].mxu1  ;;  %328 = vmax.xlane.f32.xlu1 %v327_v58 }
 0x492   :  { %v1304_v60 = vpop.f32.mrb[11].mxu1 }
 0x497   :  { %v439_v61 = vpop.f32.mrb[12].mxu1 }
 0x498   :  { %v1315_v62 = vpop.f32.mrb[13].mxu1  ;;  %v445_v63 = vsel %vm167_vm2, %v439_v61, -inf }
 0x499   :  { %v442_v1 = vpop.f32.mrb[14].mxu1  ;;  %446 = vmax.xlane.f32.xlu0 %v445_v63 }
 0x49a   :  { %v1316_v2 = vpop.f32.mrb[15].mxu1 }
 0x49f   :  { %v557_v3 = vpop.f32.mrb[16].mxu1 }
 0x4a0   :  { %v1327_v4 = vpop.f32.mrb[17].mxu1  ;;  %v563_v5 = vsel %vm167_vm2, %v557_v3, -inf }
 0x4a1   :  { %v560_v6 = vpop.f32.mrb[18].mxu1  ;;  %564 = vmax.xlane.f32.xlu0 %v563_v5 }
 0x4a2   :  { %v1328_v7 = vpop.f32.mrb[19].mxu1 }
 0x4a7   :  { %v674_v8 = vpop.f32.mrb[20].mxu1 }
 0x4a8   :  { %v1339_v9 = vpop.f32.mrb[21].mxu1  ;;  %v680_v10 = vsel %vm167_vm2, %v674_v8, -inf }
 0x4a9   :  { %681 = vmax.xlane.f32.xlu1 %v680_v10  ;;  %v677_v12 = vpop.f32.mrb[22].mxu1 }
 0x4aa   :  { %v1340_v13 = vpop.f32.mrb[23].mxu1 }
 0x4af   :  { %v787_v14 = vpop.f32.mrb[24].mxu1 }
 0x4b0   :  { %v1351_v15 = vpop.f32.mrb[25].mxu1  ;;  %v793_v16 = vsel %vm167_vm2, %v787_v14, -inf }
 0x4b1   :  { %794 = vmax.xlane.f32.xlu0 %v793_v16  ;;  %v790_v17 = vpop.f32.mrb[26].mxu1 }
 0x4b2   :  { %v1352_v18 = vpop.f32.mrb[27].mxu1 }
 0x4b7   :  { %v904_v19 = vpop.f32.mrb[28].mxu1 }
 0x4b8   :  { %v1363_v20 = vpop.f32.mrb[29].mxu1  ;;  %v910_v21 = vsel %vm167_vm2, %v904_v19, -inf }
 0x4b9   :  { %911 = vmax.xlane.f32.xlu1 %v910_v21  ;;  %v907_v23 = vpop.f32.mrb[30].mxu1 }
 0x4ba   :  { %v1364_v24 = vpop.f32.mrb[31].mxu1 }
 0x4bf   :  { %v1021_v25 = vpop.f32.mrb[32].mxu1 }
 0x4c0   :  { %v1375_v26 = vpop.f32.mrb[33].mxu1  ;;  %v1027_v27 = vsel %vm167_vm2, %v1021_v25, -inf }
 0x4c1   :  { %1028 = vmax.xlane.f32.xlu0 %v1027_v27  ;;  %v1024_v28 = vpop.f32.mrb[34].mxu1 }
 0x4c2   :  { %v1376_v29 = vpop.f32.mrb[35].mxu1 }
 0x4ca   :  { %341 = vrot.lane.b32.xlu1 %v1692_v11, %s1587_s11 }
 0x4d7   :  { %459 = vrot.lane.b32.xlu0 %v1692_v11, %s1588_s12 }
 0x51e   :  { %v329_v30 = vpop.xlane.xlu1 %328 }
 0x51f   :  { %v330_v31 = vsub.f32 %v321_v56, %v329_v30 }
 0x521   :  { %v331_v32 = vmul.f32 1.442695, %v330_v31 }
 0x523   :  { %1427 = vpow2.f32 %v331_v32 }
 0x526   :  { %v447_v33 = vpop.xlane.xlu0 %446 }
 0x527   :  { %v448_v34 = vsub.f32 %v439_v61, %v447_v33 }
 0x529   :  { %v449_v35 = vmul.f32 1.442695, %v448_v34 }
 0x52b   :  { %1429 = vpow2.f32 %v449_v35 }
 0x52d   :  { %v1428_v36 = vpop.eup %1427 }
 0x52e   :  { %v565_v37 = vpop.xlane.xlu0 %564  ;;  %v333_v38 = vsel %vm167_vm2, %v1428_v36, 0.0 }
 0x52f   :  { %v566_v39 = vsub.f32 %v557_v3, %v565_v37  ;;  %334 = vadd.xlane.f32.xlu1 %v333_v38 }
 0x531   :  { %v567_v40 = vmul.f32 1.442695, %v566_v39 }
 0x533   :  { %1431 = vpow2.f32 %v567_v40 }
 0x535   :  { %v1430_v41 = vpop.eup %1429 }
 0x536   :  { %v451_v42 = vsel %vm167_vm2, %v1430_v41, 0.0  ;;  %v682_v45 = vpop.xlane.xlu1 %681 }
 0x537   :  { %452 = vadd.xlane.f32.xlu0 %v451_v42  ;;  %v683_v49 = vsub.f32 %v674_v8, %v682_v45 }
 0x539   :  { %v684_v51 = vmul.f32 1.442695, %v683_v49 }
 0x53b   :  { %1433 = vpow2.f32 %v684_v51 }
 0x53d   :  { %v1781_v43 = vpop.eup %1431 }
 0x53e   :  { %v569_v44 = vsel %vm167_vm2, %v1781_v43, 0.0  ;;  %v795_v50 = vpop.xlane.xlu0 %794 }
 0x53f   :  { %570 = vadd.xlane.f32.xlu1 %v569_v44  ;;  %v796_v52 = vsub.f32 %v787_v14, %v795_v50 }
 0x541   :  { %v797_v55 = vmul.f32 1.442695, %v796_v52 }
 0x543   :  { %1435 = vpow2.f32 %v797_v55 }
 0x546   :  { %v912_v46 = vpop.xlane.xlu1 %911 }
 0x547   :  { %v913_v54 = vsub.f32 %v904_v19, %v912_v46 }
 0x549   :  { %v914_v57 = vmul.f32 1.442695, %v913_v54 }
 0x54a   :  { %v342_v47 = vpop.permute.xlu1 %341 }
 0x54b   :  { %v347_v48 = vsel %vm232_vm3, %v342_v47, 0  ;;  %1437 = vpow2.f32 %v914_v57 }
 0x54c   :  { %1306 = vmatpush3.bf16.msra.mxu0 %v347_v48 }
 0x54d   :  { %577 = vrot.lane.b32.xlu0 %v1692_v11, %s1589_s13  ;;  %1317 = vmatprep.subr.bf16.mxu0 %v1578_v0  ;;  %v1434_v11 = vpop.eup %1433 }
 0x54e   :  { %v1029_v53 = vpop.xlane.xlu0 %1028  ;;  %v686_v59 = vsel %vm167_vm2, %v1434_v11, 0.0  ;;  %v1792_v60 = vpop.eup %1435 }
 0x54f   :  { %v1030_v56 = vsub.f32 %v1021_v25, %v1029_v53  ;;  %v799_v62 = vsel %vm167_vm2, %v1792_v60, 0.0 }
 0x550   :  { %694 = vrot.lane.b32.xlu1 %v1711_v22, %s1575_s30  ;;  %s1590_s30 = smov 8  }
 0x551   :  { %v1031_v58 = vmul.f32 1.442695, %v1030_v56 }
 0x552   :  { %v460_v4 = vpop.permute.xlu0 %459 }
 0x553   :  { %1439 = vpow2.f32 %v1031_v58  ;;  %v465_v9 = vsel %vm232_vm3, %v460_v4, 0 }
 0x555   :  { %v1794_v61 = vpop.eup %1437 }
 0x556   :  { %v916_v2 = vsel %vm167_vm2, %v1794_v61, 0.0 }
 0x55d   :  { %v1798_v63 = vpop.eup %1439 }
 0x55e   :  { %v1033_v1 = vsel %vm167_vm2, %v1798_v63, 0.0 }
 0x56c   :  { %687 = vadd.xlane.f32.xlu0 %v686_v59 }
 0x570   :  { %800 = vadd.xlane.f32.xlu0 %v799_v62 }
 0x574   :  { %1034 = vadd.xlane.f32.xlu0 %v1033_v1  ;;  %917 = vadd.xlane.f32.xlu1 %v916_v2  ;;  %v1422_v1 = vld [vmem:[#allocation8 + $0x8] sm:$0xff]  }
 0x585   :  { %924 = vrot.lane.b32.xlu1 %v1711_v22, %s1588_s12 }
 0x589   :  { %1041 = vrot.lane.b32.xlu1 %v1711_v22, %s1589_s13 }
 0x58a   :  { %807 = vrot.lane.b32.xlu0 %v1711_v22, %s1587_s11 }
 0x5bc   :  { %v335_v3 = vpop.xlane.xlu1 %334 }
 0x5bd   :  { %1441 = vrcp.f32 %v335_v3 }
 0x5c4   :  { %v453_v5 = vpop.xlane.xlu0 %452 }
 0x5c5   :  { %1443 = vrcp.f32 %v453_v5 }
 0x5c7   :  { %v1442_v6 = vpop.eup %1441 }
 0x5c8   :  { %v337_v7 = vmul.f32 %v1442_v6, %v1428_v36  ;;  %v578_v13 = vpop.permute.xlu0 %577 }
 0x5c9   :  { %v583_v15 = vsel %vm232_vm3, %v578_v13, 0 }
 0x5ca   :  { %339 = vst.msk [vmem:[#allocation10 + $0x8] sm:$0xff] %vm167_vm2, %v337_v7  ;;  %v340_v8 = vpack.c.bf16 %v337_v7, %v337_v7 }
 0x5cc   :  { %1308 = vmatmul.mubr.msk.bf16.vlgmr.msra.gmra.mrb[4].mxu0 %vm167_vm2, %v340_v8  ;;  %v571_v10 = vpop.xlane.xlu1 %570 }
 0x5cd   :  { %1318 = vmatpush3.bf16.msra.mxu0 %v465_v9  ;;  %1445 = vrcp.f32 %v571_v10  ;;  %1319 = vmatprep.mubr.msk.bf16.mxu0 %vm1579_vm0, %v1578_v0 }
 0x5ce   :  { %1329 = vmatprep.subr.bf16.mxu0 %v1578_v0 }
 0x5cf   :  { %v1444_v22 = vpop.eup %1443 }
 0x5d0   :  { %v455_v12 = vmul.f32 %v1444_v22, %v1430_v41  ;;  %v695_v18 = vpop.permute.xlu1 %694 }
 0x5d1   :  { %v700_v20 = vsel %vm232_vm3, %v695_v18, 0 }
 0x5d2   :  { %457 = vst.msk [vmem:[#allocation10 + $0x10] sm:$0xff] %vm167_vm2, %v455_v12  ;;  %v458_v14 = vpack.c.bf16 %v455_v12, %v455_v12 }
 0x5d4   :  { %1320 = vmatmul.mubr.msk.bf16.vlgmr.msra.gmra.mrb[8].mxu0 %vm167_vm2, %v458_v14 }
 0x5d5   :  { %1330 = vmatpush3.bf16.msra.mxu0 %v583_v15  ;;  %1331 = vmatprep.mubr.msk.bf16.mxu0 %vm1579_vm0, %v1578_v0 }
 0x5d6   :  { %1341 = vmatprep.subr.bf16.mxu0 %v1578_v0 }
 0x5d7   :  { %v1446_v16 = vpop.eup %1445 }
 0x5d8   :  { %v573_v17 = vmul.f32 %v1446_v16, %v1781_v43 }
 0x5da   :  { %575 = vst.msk [vmem:[#allocation10 + $0x18] sm:$0xff] %vm167_vm2, %v573_v17  ;;  %v576_v19 = vpack.c.bf16 %v573_v17, %v573_v17 }
 0x5dc   :  { %1332 = vmatmul.mubr.msk.bf16.vlgmr.msra.gmra.mrb[12].mxu0 %vm167_vm2, %v576_v19 }
 0x5dd   :  { %1342 = vmatpush3.bf16.msra.mxu0 %v700_v20  ;;  %1343 = vmatprep.mubr.msk.bf16.mxu0 %vm1579_vm0, %v1578_v0 }
 0x5de   :  { %1353 = vmatprep.subr.bf16.mxu0 %v1578_v0 }
 0x5f9   :  { %v688_v21 = vpop.xlane.xlu0 %687 }
 0x5fa   :  { %1447 = vrcp.f32 %v688_v21 }
 0x5fd   :  { %v801_v23 = vpop.xlane.xlu0 %800 }
 0x5fe   :  { %1449 = vrcp.f32 %v801_v23 }
 0x601   :  { %v1035_v24 = vpop.xlane.xlu0 %1034  ;;  %v918_v25 = vpop.xlane.xlu1 %917 }
 0x602   :  { %1451 = vrcp.f32 %v1035_v24 }
 0x603   :  { %1453 = vrcp.f32 %v918_v25 }
 0x604   :  { %v1448_v26 = vpop.eup %1447 }
 0x605   :  { %v690_v27 = vmul.f32 %v1448_v26, %v1434_v11  ;;  %v808_v28 = vpop.permute.xlu0 %807  ;;  %v925_v37 = vpop.permute.xlu1 %924 }
 0x606   :  { %v813_v32 = vsel %vm232_vm3, %v808_v28, 0  ;;  %v930_v39 = vsel %vm232_vm3, %v925_v37, 0 }
 0x607   :  { %692 = vst.msk [vmem:[#allocation10 + $0x20] sm:$0xff] %vm167_vm2, %v690_v27  ;;  %v693_v29 = vpack.c.bf16 %v690_v27, %v690_v27 }
 0x608   :  { %v1450_v30 = vpop.eup %1449 }
 0x609   :  { %v803_v31 = vmul.f32 %v1450_v30, %v1792_v60  ;;  %1344 = vmatmul.mubr.msk.bf16.vlgmr.msra.gmra.mrb[16].mxu0 %vm167_vm2, %v693_v29  ;;  %v1042_v40 = vpop.permute.xlu1 %1041 }
 0x60a   :  { %1354 = vmatpush3.bf16.msra.mxu0 %v813_v32  ;;  %1355 = vmatprep.mubr.msk.bf16.mxu0 %vm1579_vm0, %v1578_v0  ;;  %v1047_v42 = vsel %vm232_vm3, %v1042_v40, 0 }
 0x60b   :  { %805 = vst.msk [vmem:[#allocation10 + $0x28] sm:$0xff] %vm167_vm2, %v803_v31  ;;  %1365 = vmatprep.subr.bf16.mxu0 %v1578_v0  ;;  %v806_v38 = vpack.c.bf16 %v803_v31, %v803_v31 }
 0x60c   :  { %v1452_v33 = vpop.eup %1451 }
 0x60d   :  { %v1454_v34 = vpop.eup %1453  ;;  %v1037_v35 = vmul.f32 %v1452_v33, %v1798_v63  ;;  %v1421_v63 = vld [vmem:[#allocation8] sm:$0xff]  }
 0x60e   :  { %v920_v36 = vmul.f32 %v1454_v34, %v1794_v61  ;;  %1384 = vmatpush3.bf16.msra.mxu1 %v1421_v63 }
 0x60f   :  { %1039 = vst.msk [vmem:[#allocation10 + $0x38] sm:$0xff] %vm167_vm2, %v1037_v35  ;;  %v1040_v43 = vpack.c.bf16 %v1037_v35, %v1037_v35  ;;  %1385 = vmatprep.subr.bf16.mxu1 %v1578_v0 }
 0x610   :  { %922 = vst.msk [vmem:[#allocation10 + $0x30] sm:$0xff] %vm167_vm2, %v920_v36  ;;  %v923_v41 = vpack.c.bf16 %v920_v36, %v920_v36 }
 0x611   :  { %1356 = vmatmul.mubr.msk.bf16.vlgmr.msra.gmra.mrb[20].mxu0 %vm167_vm2, %v806_v38 }
 0x612   :  { %1366 = vmatpush3.bf16.msra.mxu0 %v930_v39  ;;  %1367 = vmatprep.mubr.msk.bf16.mxu0 %vm1579_vm0, %v1578_v0 }
 0x613   :  { %1377 = vmatprep.subr.bf16.mxu0 %v1578_v0  ;;  %1386 = vmatpush3.bf16.msra.mxu1 %v1422_v1 }
 0x619   :  { %1368 = vmatmul.mubr.msk.bf16.vlgmr.msra.gmra.mrb[24].mxu0 %vm167_vm2, %v923_v41 }
 0x61a   :  { %1378 = vmatpush3.bf16.msra.mxu0 %v1047_v42  ;;  %1379 = vmatprep.mubr.msk.bf16.mxu0 %vm1579_vm0, %v1578_v0 }
 0x621   :  { %1380 = vmatmul.mubr.msk.bf16.vlgmr.msra.gmra.mrb[28].mxu0 %vm167_vm2, %v1040_v43 }
 0x69f   :  { %v383_v44 = vpop.f32.mrb[4].mxu0 }
 0x6a0   :  { %390 = vrot.lane.b32.xlu1 %v383_v44, %s1590_s30  ;;  %v1309_v45 = vpop.f32.mrb[5].mxu0 }
 0x6a1   :  { %v386_v46 = vpop.f32.mrb[6].mxu0 }
 0x6a2   :  { %v1310_v47 = vpop.f32.mrb[7].mxu0 }
 0x6a7   :  { %v501_v48 = vpop.f32.mrb[8].mxu0 }
 0x6a8   :  { %508 = vrot.lane.b32.xlu0 %v501_v48, %s1591_s14  ;;  %v1321_v49 = vpop.f32.mrb[9].mxu0 }
 0x6a9   :  { %v504_v50 = vpop.f32.mrb[10].mxu0 }
 0x6aa   :  { %v1322_v51 = vpop.f32.mrb[11].mxu0 }
 0x6af   :  { %v619_v52 = vpop.f32.mrb[12].mxu0 }
 0x6b0   :  { %626 = vrot.lane.b32.xlu0 %v619_v52, %s1592_s15  ;;  %v1333_v53 = vpop.f32.mrb[13].mxu0 }
 0x6b1   :  { %v622_v54 = vpop.f32.mrb[14].mxu0 }
 0x6b2   :  { %v1334_v55 = vpop.f32.mrb[15].mxu0 }
 0x6dc   :  { %v736_v56 = vpop.f32.mrb[16].mxu0 }
 0x6dd   :  { %742 = vst.msk [vmem:[#allocation2 + $0x8] sm:$0xff] %vm167_vm2, %v736_v56  ;;  %v1345_v57 = vpop.f32.mrb[17].mxu0 }
 0x6de   :  { %v739_v58 = vpop.f32.mrb[18].mxu0 }
 0x6df   :  { %v1346_v11 = vpop.f32.mrb[19].mxu0 }
 0x6e4   :  { %v849_v59 = vpop.f32.mrb[20].mxu0 }
 0x6e5   :  { %856 = vrot.lane.b32.xlu1 %v849_v59, %s1590_s30  ;;  %v1357_v60 = vpop.f32.mrb[21].mxu0 }
 0x6e6   :  { %v852_v61 = vpop.f32.mrb[22].mxu0 }
 0x6e7   :  { %v1358_v62 = vpop.f32.mrb[23].mxu0 }
 0x6ec   :  { %v966_v2 = vpop.f32.mrb[24].mxu0 }
 0x6ed   :  { %973 = vrot.lane.b32.xlu1 %v966_v2, %s1591_s14  ;;  %v1369_v3 = vpop.f32.mrb[25].mxu0 }
 0x6ee   :  { %v969_v4 = vpop.f32.mrb[26].mxu0 }
 0x6ef   :  { %v1370_v5 = vpop.f32.mrb[27].mxu0 }
 0x6f4   :  { %v1083_v6 = vpop.f32.mrb[28].mxu0 }
 0x6f5   :  { %1090 = vrot.lane.b32.xlu1 %v1083_v6, %s1592_s15  ;;  %v1381_v7 = vpop.f32.mrb[29].mxu0 }
 0x6f6   :  { %v1086_v8 = vpop.f32.mrb[30].mxu0 }
 0x6f7   :  { %v1382_v9 = vpop.f32.mrb[31].mxu0 }
 0x712   :  { %v391_v10 = vpop.permute.xlu1 %390 }
 0x713   :  { %394 = vst.msk [vmem:[#allocation2] sm:$0xff] %vm393_vm4, %v391_v10 }
 0x71a   :  { %v509_v22 = vpop.permute.xlu0 %508 }
 0x71b   :  { %512 = vst.msk [vmem:[#allocation2] sm:$0xff] %vm511_vm5, %v509_v22 }
 0x722   :  { %v627_v12 = vpop.permute.xlu0 %626 }
 0x723   :  { %630 = vst.msk [vmem:[#allocation2] sm:$0xff] %vm629_vm6, %v627_v12 }
 0x72a   :  { %v1094_v15 = vld [vmem:[#allocation2] sm:$0xff] }
 0x757   :  { %v857_v0 = vpop.permute.xlu1 %856 }
 0x758   :  { %859 = vst.msk [vmem:[#allocation2 + $0x8] sm:$0xff] %vm393_vm4, %v857_v0 }
 0x75f   :  { %v974_v13 = vpop.permute.xlu1 %973 }
 0x760   :  { %976 = vst.msk [vmem:[#allocation2 + $0x8] sm:$0xff] %vm511_vm5, %v974_v13 }
 0x767   :  { %v1091_v14 = vpop.permute.xlu1 %1090 }
 0x768   :  { %1093 = vst.msk [vmem:[#allocation2 + $0x8] sm:$0xff] %vm629_vm6, %v1091_v14 }
 0x76f   :  { %v1095_v16 = vld [vmem:[#allocation2 + $0x8] sm:$0xff] }
 0x770   :  { %v1096_v17 = vpack.c.bf16 %v1095_v16, %v1094_v15 }
 0x772   :  { %1388 = vmatmul.mubr.msk.bf16.vlgmr.msra.gmra.mrb[36].mxu1 %vm1120_vm7, %v1096_v17 }
 0x773   :  { %1532 = shalt.err (!%p1529_p0)
}
 0x774   :  { %s1533_s20 = scalar_lea.hbm %s1892_s5, 1024 }
 0x775   :  { %p1534_p1 = scmp.ne.s32.totalorder %s1892_s5, %s1533_s20  ;;  %p1537_p2 = scmp.lt.u32.totalorder %s1533_s20, %s1892_s5 }
 0x777   :  { %p1539_p3 = pnand %p1537_p2, %p1534_p1 }
 0x779   :  { %1542 = shalt.err (!%p1539_p3)
}
 0x77a   :  { %s1594_s26 = smov 128   ;;  %v1225_v18 = vld [vmem:[%s1890_s3] ss:$0 sm:$0xff]  ;;  %s1595_s2 = smov [#allocation9]  }
 0x77b   :  { %1190 = dma.vmem_to_hbm [thread:$0]  %s1185_s1, 1024, %s1892_s5, [#allocation11], %s1594_s26, %s1594_s26, %s1590_s30  }
 0x77c   :  { %s1172_s29 = sshll.u32 %s1595_s2, 4  ;;  %s1173_s29 = int_to_ptr.vmem [resolvable:$true] %s1172_s29 }
 0x77d   :  { %s1543_s6 = scalar_lea.vmem %s1173_s29, 256  ;;  %p1548_p5 = scmp.lt.s32.totalorder %s1173_s29, %s1173_s29 }
 0x77e   :  { %p1544_p4 = scmp.ne.s32.totalorder %s1173_s29, %s1543_s6  ;;  %p1549_p6 = scmp.lt.s32.totalorder %s1543_s6, %s1543_s6 }
 0x780   :  { %p1550_p7 = por %p1549_p6, %p1548_p5 }
 0x782   :  { %p1551_p8 = pnand %p1550_p7, %p1544_p4 }
 0x845   :  { %v1158_v19 = vpop.f32.mrb[36].mxu1 }
 0x846   :  { %v1159_v20 = vadd.f32 %v1225_v18, %v1158_v19  ;;  %v1389_v21 = vpop.f32.mrb[37].mxu1 }
 0x847   :  { %v1161_v23 = vpop.f32.mrb[38].mxu1 }
 0x848   :  { %1165 = vst.msk [vmem:[#allocation9] sm:$0xff] %vm1120_vm7, %v1159_v20  ;;  %v1162_v24 = vadd.f32 %v1225_v18, %v1161_v23  ;;  %v1390_v25 = vpop.f32.mrb[39].mxu1 }
 0x84a   :  { %1166 = vst.msk [vmem:[#allocation9 + $0x8] sm:$0xff] %vm1120_vm7, %v1162_v24 }
 0x84b   :  { %1554 = shalt.err (!%p1551_p8)
}
 0x84c   :  { %s1555_s7 = scalar_lea.hbm %s1891_s4, 256 }
 0x84d   :  { %p1556_p9 = scmp.ne.s32.totalorder %s1891_s4, %s1555_s7  ;;  %p1559_p10 = scmp.lt.u32.totalorder %s1555_s7, %s1891_s4 }
 0x84f   :  { %p1561_p11 = pnand %p1559_p10, %p1556_p9 }
 0x851   :  { %1564 = shalt.err (!%p1561_p11)
}
 0x852   :  { %1178 = dma.vmem_to_hbm [thread:$0]  %s1173_s29, 256, %s1891_s4, [#allocation5], %s1594_s26, %s1594_s26, %s1590_s30  }
 0x853   :  { %1569 = dma.done.wait [#allocation5], 256  }
 0x854   :  { %1570 = vsyncadd [#allocation5], 4294967040 }
 0x855   :  { %1571 = dma.done.wait [#allocation11], 1024  }
 0x856   :  { %1572 = vsyncadd [#allocation11], 4294966272 }
 0x857   :  { %1197 = vsyncpa [#allocation4], 1 }
 0x858   :  { %1198 = vsyncpa [#allocation7], 1 }
 0x859   :  { %1199 = vsyncpa [#allocation5], 1 }
 0x85a   :  { %1200 = vsyncpa [#allocation11], 1 }

</bundles_post_ra>
